<compile_context>
chip_gen: v7x
topology: tpu7x:2x2x1
jax: 0.10.0
libtpu: 0.0.40
codegen_flags: <defaults>
</compile_context>

<pallas_src>
import jax
import jax.numpy as jnp
from jax.experimental import pallas as pl
from jax.experimental.pallas import tpu as pltpu

LAYER_DIMS = [256, 128, 64, 32, 16, 8, 4]   # output dims of the 7 Linear layers
OUT_DIM = LAYER_DIMS[-1]

# Layers 1..6 ((din,dout) = (256,128),(128,64),(64,32),(32,16),(16,8),(8,4))
# are packed into one bf16 slab of shape (896, 256); each layer's (padded)
# weight sits at rows [off, off+din_p), cols [0, 128).
W_SLAB_OFFS = [0, 256, 384, 512, 640, 768]
W_SLAB_DINS = [256, 128, 128, 128, 128, 128]
W_SLAB_ROWS = 896
W_SLAB_COLS = 256      # = max padded dout (layer 0's 256)


def _round_up(n, m):
    return ((n + m - 1) // m) * m


def _default_bf16_relu():
    # v5e ("v5 lite") has no bf16 VALU: keep the ReLU epilogue in f32 there.
    try:
        kind = jax.devices()[0].device_kind.lower()
    except Exception:
        return True
    return not ("v5e" in kind or "v5 lite" in kind or "v5litepod" in kind)


# ---------------------------------------------------------------------------
# Kernel: whole MLP on one batch tile.
#   x_ref:     (TB, input_size) f32
#   w0_ref:    (input_size, 256) bf16              (layer-0 weight)
#   wslab_ref: (896, 256)        bf16              (layers 1..6, zero padded)
#   bslab_ref: (8, 256)          f32               (row i = bias of layer i)
#   out_ref:   (TB, 4)           f32
# ---------------------------------------------------------------------------
def make_mlp_kernel(bf16_relu):
    def mlp_kernel(x_ref, w0_ref, wslab_ref, bslab_ref, out_ref):
        def act(z):
            # bias add stays f32 (exact); ReLU after the bf16 cast is exact for
            # max(.,0) and halves the VALU vreg count on bf16-VALU chips.
            if bf16_relu:
                return jnp.maximum(z.astype(jnp.bfloat16), 0)
            return jnp.maximum(z, 0.0).astype(jnp.bfloat16)

        h = x_ref[...].astype(jnp.bfloat16)                          # (TB, in)

        # Layer 0: (TB,in) @ (in,256) -> (TB,256)
        z = jnp.dot(h, w0_ref[...], preferred_element_type=jnp.float32)
        z = z + bslab_ref[0:1, 0:256]
        h = act(z)

        # Layers 1..6: all operate on 128-lane padded tiles from the slab.
        for li in range(6):
            r0 = W_SLAB_OFFS[li]
            w = wslab_ref[r0:r0 + W_SLAB_DINS[li], 0:128]            # static ref slice
            z = jnp.dot(h, w, preferred_element_type=jnp.float32)    # (TB,128) f32
            z = z + bslab_ref[li + 1:li + 2, 0:128]
            if li < 5:
                h = act(z)
            else:
                out_ref[...] = z[:, :OUT_DIM]                        # (TB,4) narrow store

    return mlp_kernel


# ---------------------------------------------------------------------------
# One-time parameter packing (do NOT call per forward).
# Zero padding is exact: padded lanes/rows stay 0 through matmul+bias+ReLU.
# ---------------------------------------------------------------------------
def pack_params(weights, biases, input_size):
    assert weights[0].shape == (input_size, LAYER_DIMS[0])
    w0 = jnp.asarray(weights[0], jnp.float32).astype(jnp.bfloat16)

    wslab = jnp.zeros((W_SLAB_ROWS, W_SLAB_COLS), jnp.bfloat16)
    bslab = jnp.zeros((8, W_SLAB_COLS), jnp.float32)
    bslab = bslab.at[0, :LAYER_DIMS[0]].set(jnp.asarray(biases[0], jnp.float32))
    for li in range(6):
        w = jnp.asarray(weights[li + 1], jnp.float32)
        din, dout = w.shape
        r0 = W_SLAB_OFFS[li]
        wslab = wslab.at[r0:r0 + din, :dout].set(w.astype(jnp.bfloat16))
        bslab = bslab.at[li + 1, :dout].set(jnp.asarray(biases[li + 1], jnp.float32))
    return (w0, wslab, bslab)


# ---------------------------------------------------------------------------
# Tile / VMEM sizing.
# ---------------------------------------------------------------------------
_VMEM_BUDGET = 48 * 1024 * 1024        # safe on v7x's 64 MiB/TC VMEM


def _per_row_bytes(input_size):
    # double-buffered f32 x tile + double-buffered f32 out tile + f32/bf16
    # intermediate headroom (z (TB,256) f32 + h (TB,256) bf16 and friends).
    return 2 * 4 * input_size + 2 * 4 * OUT_DIM + 2048


def _fixed_bytes(input_size):
    # resident params (counted double-buffered to be conservative).
    return 2 * (input_size * 256 * 2 + W_SLAB_ROWS * W_SLAB_COLS * 2 + 8 * 256 * 4)


def _choose_tile(batch, input_size, block_b):
    # VMEM-derived cap on the tile.
    cap = max(16, (_VMEM_BUDGET - _fixed_bytes(input_size)) // _per_row_bytes(input_size))
    tb_cap = max(16, (min(block_b, cap) // 16) * 16)
    # Balanced steps; force >=2 steps when B > 16 so both v7x TCs get work.
    nsteps = max(1, pl.cdiv(batch, tb_cap))
    if batch > 16:
        nsteps = max(nsteps, 2)
    tb = _round_up(pl.cdiv(batch, nsteps), 16)
    return max(16, min(tb, tb_cap))


# ---------------------------------------------------------------------------
# Forward wrapper.
# ---------------------------------------------------------------------------
def regression_model_forward(x, packed_params, *, block_b=8192, bf16_relu=None):
    """x: (..., input_size) f32.  packed_params: output of pack_params()."""
    if bf16_relu is None:
        bf16_relu = _default_bf16_relu()
    w0, wslab, bslab = packed_params
    input_size = w0.shape[0]

    orig_shape = x.shape
    assert orig_shape[-1] == input_size
    x2d = x.reshape(-1, input_size).astype(jnp.float32)
    B = x2d.shape[0]

    tb = _choose_tile(B, input_size, block_b)
    Bp = _round_up(max(B, tb), tb)
    if Bp != B:
        x2d = jnp.pad(x2d, ((0, Bp - B), (0, 0)))

    grid = (Bp // tb,)
    in_specs = [
        pl.BlockSpec((tb, input_size), lambda i: (i, 0)),        # streamed x tile
        pl.BlockSpec(w0.shape, lambda i: (0, 0)),                # resident params
        pl.BlockSpec(wslab.shape, lambda i: (0, 0)),
        pl.BlockSpec(bslab.shape, lambda i: (0, 0)),
    ]

    vmem_bytes = _fixed_bytes(input_size) + tb * _per_row_bytes(input_size) + (2 << 20)
    vmem_limit = int(min(max(vmem_bytes, 32 << 20), 56 << 20))

    out = pl.pallas_call(
        make_mlp_kernel(bf16_relu),
        out_shape=jax.ShapeDtypeStruct((Bp, OUT_DIM), jnp.float32),
        grid=grid,
        in_specs=in_specs,
        out_specs=pl.BlockSpec((tb, OUT_DIM), lambda i: (i, 0)),
        compiler_params=pltpu.CompilerParams(
            dimension_semantics=("parallel",),       # megacore sharding on v7x
            vmem_limit_bytes=vmem_limit),
    )(x2d, w0, wslab, bslab)

    out = out[:B].reshape(orig_shape[:-1] + (OUT_DIM,))
    # PyTorch: reg_model_output.squeeze(0) — only drops dim 0 if it has size 1.
    if out.shape[0] == 1:
        out = jnp.squeeze(out, axis=0)
    return out


# ---------------------------------------------------------------------------
# Init + pure-JAX reference (f32) for correctness checking.
# ---------------------------------------------------------------------------
def init_params(key, input_size):
    """PyTorch nn.Linear-style init: U(-1/sqrt(fan_in), 1/sqrt(fan_in))."""
    dims = [input_size] + LAYER_DIMS
    weights, biases = [], []
    for i in range(len(LAYER_DIMS)):
        key, kw, kb = jax.random.split(key, 3)
        bound = 1.0 / (dims[i] ** 0.5)
        weights.append(
            jax.random.uniform(kw, (dims[i], dims[i + 1]), jnp.float32, -bound, bound))
        biases.append(
            jax.random.uniform(kb, (dims[i + 1],), jnp.float32, -bound, bound))
    return weights, biases


def reference_forward(x, weights, biases):
    h = x.astype(jnp.float32)
    for i, (w, b) in enumerate(zip(weights, biases)):
        h = h @ w + b
        if i < len(weights) - 1:
            h = jnp.maximum(h, 0.0)
    if h.shape[0] == 1:
        h = jnp.squeeze(h, axis=0)
    return h


if __name__ == "__main__":
    key = jax.random.PRNGKey(0)
    input_size = 32

    key, kx = jax.random.split(key)
    x = jax.random.normal(kx, (1, 8, input_size), jnp.float32)   # exercises squeeze(0)
    weights, biases = init_params(key, input_size)
    packed = pack_params(weights, biases, input_size)            # packed once

    out = jax.block_until_ready(regression_model_forward(x, packed))
    ref = jax.block_until_ready(reference_forward(x, weights, biases))
    assert out.shape == (8, OUT_DIM), out.shape
    # bf16 MXU inputs with f32 accumulation -> relaxed tolerance vs f32 reference.
    assert jnp.allclose(out, ref, atol=2e-2, rtol=2e-2), "mismatch vs reference"

    # Second check: multi-step batch grid (padding + tiling + megacore path).
    key, kx2 = jax.random.split(key)
    x2 = jax.random.normal(kx2, (3, 200, input_size), jnp.float32)
    out2 = jax.block_until_ready(
        regression_model_forward(x2, packed, block_b=256))
    ref2 = jax.block_until_ready(reference_forward(x2, weights, biases))
    assert out2.shape == (3, 200, OUT_DIM), out2.shape
    assert jnp.allclose(out2, ref2, atol=2e-2, rtol=2e-2), "mismatch vs reference (tiled)"

    print("KERNEL_OK")
</pallas_src>

<mosaic_0001>
module attributes {stable_mosaic.version = 11 : i64} {
  func.func @mlp_kernel(%arg0: i32, %arg1: memref<16x32xf32, #tpu.memory_space<vmem>>, %arg2: memref<32x256xbf16, #tpu.memory_space<vmem>>, %arg3: memref<896x256xbf16, #tpu.memory_space<vmem>>, %arg4: memref<8x256xf32, #tpu.memory_space<vmem>>, %arg5: memref<16x4xf32, #tpu.memory_space<vmem>>) attributes {dimension_semantics = [#tpu.dimension_semantics<parallel>], iteration_bounds = array<i64: 1>, scalar_prefetch = 0 : i64, scratch_operands = 0 : i64, tpu.core_type = #tpu.core_type<tc>, window_params = [{transform_indices = @transform_0, window_bounds = array<i64: 16, 32>}, {pipeline_mode = #tpu.pipeline_mode<synchronous>, transform_indices = @transform_1, window_bounds = array<i64: 32, 256>}, {pipeline_mode = #tpu.pipeline_mode<synchronous>, transform_indices = @transform_2, window_bounds = array<i64: 896, 256>}, {pipeline_mode = #tpu.pipeline_mode<synchronous>, transform_indices = @transform_3, window_bounds = array<i64: 8, 256>}, {transform_indices = @transform_4, window_bounds = array<i64: 16, 4>}]} {
    %c0 = arith.constant 0 : index
    %c0_0 = arith.constant 0 : index
    %0 = vector.load %arg1[%c0, %c0_0] : memref<16x32xf32, #tpu.memory_space<vmem>>, vector<16x32xf32>
    %1 = arith.truncf %0 : vector<16x32xf32> to vector<16x32xbf16>
    %c0_1 = arith.constant 0 : index
    %c0_2 = arith.constant 0 : index
    %2 = vector.load %arg2[%c0_1, %c0_2] : memref<32x256xbf16, #tpu.memory_space<vmem>>, vector<32x256xbf16>
    %cst = arith.constant dense<0.000000e+00> : vector<16x256xf32>
    %3 = tpu.matmul %1, %2, %cst {dimension_numbers = #tpu.dot_dimension_numbers<[1], [0], [0], [1], [0, 0, 1, 1], [], []>} : vector<16x32xbf16>, vector<32x256xbf16>, vector<16x256xf32> -> vector<16x256xf32>
    %c0_3 = arith.constant 0 : index
    %c0_4 = arith.constant 0 : index
    %4 = vector.load %arg4[%c0_3, %c0_4] : memref<8x256xf32, #tpu.memory_space<vmem>>, vector<1x256xf32>
    %5 = vector.broadcast %4 : vector<1x256xf32> to vector<16x256xf32>
    %6 = arith.addf %3, %5 : vector<16x256xf32>
    %7 = arith.truncf %6 : vector<16x256xf32> to vector<16x256xbf16>
    %cst_5 = arith.constant 0.000000e+00 : bf16
    %8 = vector.broadcast %cst_5 : bf16 to vector<16x256xbf16>
    %9 = arith.maximumf %7, %8 : vector<16x256xbf16>
    %c0_6 = arith.constant 0 : index
    %c0_7 = arith.constant 0 : index
    %10 = vector.load %arg3[%c0_6, %c0_7] : memref<896x256xbf16, #tpu.memory_space<vmem>>, vector<256x128xbf16>
    %cst_8 = arith.constant dense<0.000000e+00> : vector<16x128xf32>
    %11 = tpu.matmul %9, %10, %cst_8 {dimension_numbers = #tpu.dot_dimension_numbers<[1], [0], [0], [1], [0, 0, 1, 1], [], []>} : vector<16x256xbf16>, vector<256x128xbf16>, vector<16x128xf32> -> vector<16x128xf32>
    %c1 = arith.constant 1 : index
    %c0_9 = arith.constant 0 : index
    %12 = vector.load %arg4[%c1, %c0_9] : memref<8x256xf32, #tpu.memory_space<vmem>>, vector<1x128xf32>
    %13 = vector.broadcast %12 : vector<1x128xf32> to vector<16x128xf32>
    %14 = arith.addf %11, %13 : vector<16x128xf32>
    %15 = arith.truncf %14 : vector<16x128xf32> to vector<16x128xbf16>
    %cst_10 = arith.constant 0.000000e+00 : bf16
    %16 = vector.broadcast %cst_10 : bf16 to vector<16x128xbf16>
    %17 = arith.maximumf %15, %16 : vector<16x128xbf16>
    %c256 = arith.constant 256 : index
    %c0_11 = arith.constant 0 : index
    %18 = vector.load %arg3[%c256, %c0_11] : memref<896x256xbf16, #tpu.memory_space<vmem>>, vector<128x128xbf16>
    %cst_12 = arith.constant dense<0.000000e+00> : vector<16x128xf32>
    %19 = tpu.matmul %17, %18, %cst_12 {dimension_numbers = #tpu.dot_dimension_numbers<[1], [0], [0], [1], [0, 0, 1, 1], [], []>} : vector<16x128xbf16>, vector<128x128xbf16>, vector<16x128xf32> -> vector<16x128xf32>
    %c2 = arith.constant 2 : index
    %c0_13 = arith.constant 0 : index
    %20 = vector.load %arg4[%c2, %c0_13] : memref<8x256xf32, #tpu.memory_space<vmem>>, vector<1x128xf32>
    %21 = vector.broadcast %20 : vector<1x128xf32> to vector<16x128xf32>
    %22 = arith.addf %19, %21 : vector<16x128xf32>
    %23 = arith.truncf %22 : vector<16x128xf32> to vector<16x128xbf16>
    %cst_14 = arith.constant 0.000000e+00 : bf16
    %24 = vector.broadcast %cst_14 : bf16 to vector<16x128xbf16>
    %25 = arith.maximumf %23, %24 : vector<16x128xbf16>
    %c384 = arith.constant 384 : index
    %c0_15 = arith.constant 0 : index
    %26 = vector.load %arg3[%c384, %c0_15] : memref<896x256xbf16, #tpu.memory_space<vmem>>, vector<128x128xbf16>
    %cst_16 = arith.constant dense<0.000000e+00> : vector<16x128xf32>
    %27 = tpu.matmul %25, %26, %cst_16 {dimension_numbers = #tpu.dot_dimension_numbers<[1], [0], [0], [1], [0, 0, 1, 1], [], []>} : vector<16x128xbf16>, vector<128x128xbf16>, vector<16x128xf32> -> vector<16x128xf32>
    %c3 = arith.constant 3 : index
    %c0_17 = arith.constant 0 : index
    %28 = vector.load %arg4[%c3, %c0_17] : memref<8x256xf32, #tpu.memory_space<vmem>>, vector<1x128xf32>
    %29 = vector.broadcast %28 : vector<1x128xf32> to vector<16x128xf32>
    %30 = arith.addf %27, %29 : vector<16x128xf32>
    %31 = arith.truncf %30 : vector<16x128xf32> to vector<16x128xbf16>
    %cst_18 = arith.constant 0.000000e+00 : bf16
    %32 = vector.broadcast %cst_18 : bf16 to vector<16x128xbf16>
    %33 = arith.maximumf %31, %32 : vector<16x128xbf16>
    %c512 = arith.constant 512 : index
    %c0_19 = arith.constant 0 : index
    %34 = vector.load %arg3[%c512, %c0_19] : memref<896x256xbf16, #tpu.memory_space<vmem>>, vector<128x128xbf16>
    %cst_20 = arith.constant dense<0.000000e+00> : vector<16x128xf32>
    %35 = tpu.matmul %33, %34, %cst_20 {dimension_numbers = #tpu.dot_dimension_numbers<[1], [0], [0], [1], [0, 0, 1, 1], [], []>} : vector<16x128xbf16>, vector<128x128xbf16>, vector<16x128xf32> -> vector<16x128xf32>
    %c4 = arith.constant 4 : index
    %c0_21 = arith.constant 0 : index
    %36 = vector.load %arg4[%c4, %c0_21] : memref<8x256xf32, #tpu.memory_space<vmem>>, vector<1x128xf32>
    %37 = vector.broadcast %36 : vector<1x128xf32> to vector<16x128xf32>
    %38 = arith.addf %35, %37 : vector<16x128xf32>
    %39 = arith.truncf %38 : vector<16x128xf32> to vector<16x128xbf16>
    %cst_22 = arith.constant 0.000000e+00 : bf16
    %40 = vector.broadcast %cst_22 : bf16 to vector<16x128xbf16>
    %41 = arith.maximumf %39, %40 : vector<16x128xbf16>
    %c640 = arith.constant 640 : index
    %c0_23 = arith.constant 0 : index
    %42 = vector.load %arg3[%c640, %c0_23] : memref<896x256xbf16, #tpu.memory_space<vmem>>, vector<128x128xbf16>
    %cst_24 = arith.constant dense<0.000000e+00> : vector<16x128xf32>
    %43 = tpu.matmul %41, %42, %cst_24 {dimension_numbers = #tpu.dot_dimension_numbers<[1], [0], [0], [1], [0, 0, 1, 1], [], []>} : vector<16x128xbf16>, vector<128x128xbf16>, vector<16x128xf32> -> vector<16x128xf32>
    %c5 = arith.constant 5 : index
    %c0_25 = arith.constant 0 : index
    %44 = vector.load %arg4[%c5, %c0_25] : memref<8x256xf32, #tpu.memory_space<vmem>>, vector<1x128xf32>
    %45 = vector.broadcast %44 : vector<1x128xf32> to vector<16x128xf32>
    %46 = arith.addf %43, %45 : vector<16x128xf32>
    %47 = arith.truncf %46 : vector<16x128xf32> to vector<16x128xbf16>
    %cst_26 = arith.constant 0.000000e+00 : bf16
    %48 = vector.broadcast %cst_26 : bf16 to vector<16x128xbf16>
    %49 = arith.maximumf %47, %48 : vector<16x128xbf16>
    %c768 = arith.constant 768 : index
    %c0_27 = arith.constant 0 : index
    %50 = vector.load %arg3[%c768, %c0_27] : memref<896x256xbf16, #tpu.memory_space<vmem>>, vector<128x128xbf16>
    %cst_28 = arith.constant dense<0.000000e+00> : vector<16x128xf32>
    %51 = tpu.matmul %49, %50, %cst_28 {dimension_numbers = #tpu.dot_dimension_numbers<[1], [0], [0], [1], [0, 0, 1, 1], [], []>} : vector<16x128xbf16>, vector<128x128xbf16>, vector<16x128xf32> -> vector<16x128xf32>
    %c6 = arith.constant 6 : index
    %c0_29 = arith.constant 0 : index
    %52 = vector.load %arg4[%c6, %c0_29] : memref<8x256xf32, #tpu.memory_space<vmem>>, vector<1x128xf32>
    %53 = vector.broadcast %52 : vector<1x128xf32> to vector<16x128xf32>
    %54 = arith.addf %51, %53 : vector<16x128xf32>
    %55 = vector.extract_strided_slice %54 {offsets = [0, 0], sizes = [16, 4], strides = [1, 1]} : vector<16x128xf32> to vector<16x4xf32>
    %c0_30 = arith.constant 0 : index
    %c0_31 = arith.constant 0 : index
    %56 = vector.load %arg5[%c0_30, %c0_31] : memref<16x4xf32, #tpu.memory_space<vmem>>, vector<16x4xf32>
    tpu.vector_store %arg5[%c0_30, %c0_31], %55 {strides = array<i32>} : memref<16x4xf32, #tpu.memory_space<vmem>>, vector<16x4xf32>,
    return
  }
  func.func @transform_0(%arg0: i32) -> (i32, i32) {
    %c0_i32 = arith.constant 0 : i32
    %c0_i32_0 = arith.constant 0 : i32
    return %arg0, %c0_i32 : i32, i32
  }
  func.func @transform_1(%arg0: i32) -> (i32, i32) {
    %c0_i32 = arith.constant 0 : i32
    %c0_i32_0 = arith.constant 0 : i32
    %c0_i32_1 = arith.constant 0 : i32
    return %c0_i32, %c0_i32_0 : i32, i32
  }
  func.func @transform_2(%arg0: i32) -> (i32, i32) {
    %c0_i32 = arith.constant 0 : i32
    %c0_i32_0 = arith.constant 0 : i32
    %c0_i32_1 = arith.constant 0 : i32
    return %c0_i32, %c0_i32_0 : i32, i32
  }
  func.func @transform_3(%arg0: i32) -> (i32, i32) {
    %c0_i32 = arith.constant 0 : i32
    %c0_i32_0 = arith.constant 0 : i32
    %c0_i32_1 = arith.constant 0 : i32
    return %c0_i32, %c0_i32_0 : i32, i32
  }
  func.func @transform_4(%arg0: i32) -> (i32, i32) {
    %c0_i32 = arith.constant 0 : i32
    %c0_i32_0 = arith.constant 0 : i32
    return %arg0, %c0_i32 : i32, i32
  }
}

</mosaic_0001>

<bundles_post_ra>
// kernel: tpu_custom_call.1
= control target key start
LH: loop header
LB: loop body
LE: loop exit
PB: predicated region body
PF: predicated region fallthrough
CT: control target
= control target key end

     0   :  { %9 = vsyncpa [#allocation3], 0  ;;  %s1436_s0 = inlined_call_operand.hbm [shape: f32[16,32], index: 0, kind: input, shape index: {}]   ;;  %s1437_s1 = inlined_call_operand.hbm [shape: bf16[32,256], index: 1, kind: input, shape index: {}]   ;;  %s1438_s2 = inlined_call_operand.hbm [shape: bf16[896,256], index: 2, kind: input, shape index: {}]   ;;  %s1439_s3 = inlined_call_operand.hbm [shape: f32[8,256], index: 3, kind: input, shape index: {}]   ;;  %s1440_s4 = inlined_call_operand.vmem [shape: f32[16,4], index: 4, kind: output, shape index: {}]  }
   0x1   :  { %10 = vsyncpa [#allocation5], 0 }
   0x2   :  { %11 = vsyncpa [#allocation8], 0  ;;  %s1274_s15 = smov [#allocation4]   ;;  %s1275_s17 = smov [#allocation2]  }
   0x3   :  { %s29_s16 = sshll.u32 %s1274_s15, 4  ;;  %s17_s18 = sshll.u32 %s1275_s17, 4  ;;  %s30_s16 = int_to_ptr.vmem [resolvable:$true] %s29_s16  ;;  %s1308_s18 = int_to_ptr.vmem [resolvable:$true] %s17_s18 }
   0x4   :  { %s1180_s21 = scalar_lea.hbm %s1437_s1, 512 }
   0x5   :  { %p1181_p0 = scmp.ne.s32.totalorder %s1437_s1, %s1180_s21  ;;  %p1184_p1 = scmp.lt.u32.totalorder %s1180_s21, %s1437_s1 }
   0x7   :  { %p1186_p2 = pnand %p1184_p1, %p1181_p0 }
   0x9   :  { %1189 = shalt.err (!%p1186_p2)
}
   0xa   :  { %s1190_s26 = scalar_lea.vmem %s30_s16, 512  ;;  %p1195_p4 = scmp.lt.s32.totalorder %s30_s16, %s30_s16 }
   0xb   :  { %p1191_p3 = scmp.ne.s32.totalorder %s30_s16, %s1190_s26  ;;  %p1196_p5 = scmp.lt.s32.totalorder %s1190_s26, %s1190_s26 }
   0xd   :  { %p1197_p6 = por %p1196_p5, %p1195_p4 }
   0xf   :  { %p1198_p7 = pnand %p1197_p6, %p1191_p3 }
  0x11   :  { %1201 = shalt.err (!%p1198_p7)
}
  0x12   :  { %s1276_s27 = smov 128   ;;  %s1277_s28 = smov 8  }
  0x13   :  { %35 = dma.hbm_to_vmem [thread:$0]  %s1437_s1, 512, %s30_s16, [#allocation5], %s1276_s27, %s1276_s27, %s1277_s28  }
  0x14   :  { %s1202_s7 = scalar_lea.hbm %s1436_s0, 256 }
  0x15   :  { %p1203_p8 = scmp.ne.s32.totalorder %s1436_s0, %s1202_s7  ;;  %p1206_p9 = scmp.lt.u32.totalorder %s1202_s7, %s1436_s0 }
  0x17   :  { %p1208_p10 = pnand %p1206_p9, %p1203_p8 }
  0x19   :  { %1211 = shalt.err (!%p1208_p10)
}
  0x1a   :  { %s1212_s12 = scalar_lea.vmem %s1308_s18, 256  ;;  %p1217_p12 = scmp.lt.s32.totalorder %s1308_s18, %s1308_s18 }
  0x1b   :  { %p1213_p11 = scmp.ne.s32.totalorder %s1308_s18, %s1212_s12  ;;  %p1218_p13 = scmp.lt.s32.totalorder %s1212_s12, %s1212_s12 }
  0x1d   :  { %p1219_p0 = por %p1218_p13, %p1217_p12 }
  0x1f   :  { %p1220_p1 = pnand %p1219_p0, %p1213_p11 }
  0x21   :  { %1223 = shalt.err (!%p1220_p1)
}
  0x22   :  { %23 = dma.hbm_to_vmem [thread:$0]  %s1436_s0, 256, %s1308_s18, [#allocation3], %s1276_s27, %s1276_s27, %s1277_s28  }
  0x23   :  { %s1278_s14 = smov [#allocation6]   ;;  %s1279_s16 = smov [#allocation7]  }
  0x24   :  { %s41_s15 = sshll.u32 %s1278_s14, 4  ;;  %s54_s17 = sshll.u32 %s1279_s16, 4  ;;  %s42_s15 = int_to_ptr.vmem [resolvable:$true] %s41_s15  ;;  %s55_s17 = int_to_ptr.vmem [resolvable:$true] %s54_s17 }
  0x25   :  { %s1224_s21 = scalar_lea.hbm %s1438_s2, 14336 }
  0x26   :  { %p1225_p2 = scmp.ne.s32.totalorder %s1438_s2, %s1224_s21  ;;  %p1228_p3 = scmp.lt.u32.totalorder %s1224_s21, %s1438_s2 }
  0x28   :  { %p1230_p4 = pnand %p1228_p3, %p1225_p2 }
  0x2a   :  { %1233 = shalt.err (!%p1230_p4)
}
  0x2b   :  { %s1234_s0 = scalar_lea.vmem %s42_s15, 14336  ;;  %p1239_p6 = scmp.lt.s32.totalorder %s42_s15, %s42_s15 }
  0x2c   :  { %p1235_p5 = scmp.ne.s32.totalorder %s42_s15, %s1234_s0  ;;  %p1240_p7 = scmp.lt.s32.totalorder %s1234_s0, %s1234_s0 }
  0x2e   :  { %p1241_p8 = por %p1240_p7, %p1239_p6 }
  0x30   :  { %p1242_p9 = pnand %p1241_p8, %p1235_p5 }
  0x32   :  { %1245 = shalt.err (!%p1242_p9)
}
  0x33   :  { %47 = dma.hbm_to_vmem [thread:$0]  %s1438_s2, 14336, %s42_s15, [#allocation5], %s1276_s27, %s1276_s27, %s1277_s28  }
  0x34   :  { %s1246_s5 = scalar_lea.hbm %s1439_s3, 256 }
  0x35   :  { %p1247_p10 = scmp.ne.s32.totalorder %s1439_s3, %s1246_s5  ;;  %p1250_p11 = scmp.lt.u32.totalorder %s1246_s5, %s1439_s3 }
  0x37   :  { %p1252_p12 = pnand %p1250_p11, %p1247_p10 }
  0x39   :  { %1255 = shalt.err (!%p1252_p12)
}
  0x3a   :  { %s1256_s10 = scalar_lea.vmem %s55_s17, 256  ;;  %p1261_p0 = scmp.lt.s32.totalorder %s55_s17, %s55_s17 }
  0x3b   :  { %p1257_p13 = scmp.ne.s32.totalorder %s55_s17, %s1256_s10  ;;  %p1262_p1 = scmp.lt.s32.totalorder %s1256_s10, %s1256_s10 }
  0x3d   :  { %p1263_p2 = por %p1262_p1, %p1261_p0 }
  0x3f   :  { %p1264_p3 = pnand %p1263_p2, %p1257_p13 }
  0x41   :  { %1267 = shalt.err (!%p1264_p3)
}
  0x42   :  { %57 = dma.hbm_to_vmem [thread:$0]  %s1439_s3, 256, %s55_s17, [#allocation8]  }
  0x43   :  { %1268 = dma.done.wait [#allocation3], 256  }
  0x44   :  { %1269 = vsyncadd [#allocation3], 4294967040 }
  0x45   :  { %1270 = dma.done.wait [#allocation5], 14848  }
  0x46   :  { %1271 = vsyncadd [#allocation5], 4294952448 }
  0x47   :  { %1272 = dma.done.wait [#allocation8], 256  }
  0x48   :  { %1273 = vsyncadd [#allocation8], 4294967040  ;;  %v1280_v0 = vmov 0   ;;  %v1118_v1 = vld [vmem:[#allocation4 + $0x4] ss:$8 sps:$4 sm:$0xff]   ;;  %v71_v5 = vld [vmem:[#allocation2] sm:$0xff]  ;;  %v80_v30 = vlaneseq }
  0x49   :  { %146 = vmatprep.mubr.bf16.mxu0 %v1280_v0  ;;  %v1120_v2 = vld [vmem:[#allocation4] ss:$8 sps:$4 sm:$0xff]   ;;  %114 = vmatprep.subr.bf16.mxu0 %v1118_v1  ;;  %v1121_v3 = vld [vmem:[#allocation4 + $0x14] ss:$8 sps:$4 sm:$0xff]   ;;  %v1123_v4 = vld [vmem:[#allocation4 + $0x10] ss:$8 sps:$4 sm:$0xff]  }
  0x4a   :  { %115 = vmatpush1.bf16.msra.mxu0 %v1120_v2  ;;  %v72_v6 = vld [vmem:[#allocation2 + $0x8] sm:$0xff]  ;;  %vm110_vm0 = vcmask 261120   ;;  %v1124_v7 = vld [vmem:[#allocation6 + $0x80] ss:$8 sps:$4 sm:$0xff]   ;;  %v1281_v25 = vmov 0.0   ;;  %v81_v31 = vshrl.u32 %v80_v30, 7 }
  0x4b   :  { %116 = vmatprep.subr.bf16.mxu0 %v1121_v3  ;;  %v1125_v8 = vld [vmem:[#allocation6] ss:$8 sps:$4 sm:$0xff]   ;;  %v73_v9 = vpack.c.bf16 %v72_v6, %v71_v5  ;;  %942 = vmatprep.subr.bf16.mxu1 %v1124_v7  ;;  %v1126_v10 = vld [vmem:[#allocation6 + $0x90] ss:$8 sps:$4 sm:$0xff]   ;;  %vm1282_vm1 = vmmov 0   ;;  %vm871_vm2 = vcmask 31744  }
  0x4c   :  { %943 = vmatpush3.bf16.msra.mxu1 %v1125_v8  ;;  %v1127_v11 = vld [vmem:[#allocation6 + $0x10] ss:$8 sps:$4 sm:$0xff]   ;;  %v1128_v12 = vld [vmem:[#allocation6 + $0xa0] ss:$8 sps:$4 sm:$0xff]   ;;  %v82_v32 = vsub.s32 0, %v81_v31  ;;  %v86_v34 = vsub.s32 1, %v81_v31 }
  0x4d   :  { %944 = vmatprep.subr.bf16.mxu1 %v1126_v10  ;;  %v1129_v13 = vld [vmem:[#allocation6 + $0x20] ss:$8 sps:$4 sm:$0xff]   ;;  %v1130_v14 = vld [vmem:[#allocation6 + $0xb0] ss:$8 sps:$4 sm:$0xff]  }
  0x4e   :  { %117 = vmatpush1.bf16.msra.mxu0 %v1123_v4  ;;  %v1131_v15 = vld [vmem:[#allocation6 + $0x30] ss:$8 sps:$4 sm:$0xff]   ;;  %v1132_v16 = vld [vmem:[#allocation6 + $0xc0] ss:$8 sps:$4 sm:$0xff]  }
  0x4f   :  { %v1133_v17 = vld [vmem:[#allocation6 + $0x40] ss:$8 sps:$4 sm:$0xff]   ;;  %v1134_v18 = vld [vmem:[#allocation6 + $0xd0] ss:$8 sps:$4 sm:$0xff]   ;;  %1009 = vmatprep.subr.bf16.mxu0 %v1281_v25 }
  0x50   :  { %945 = vmatpush3.bf16.msra.mxu1 %v1127_v11  ;;  %v1135_v19 = vld [vmem:[#allocation6 + $0x50] ss:$8 sps:$4 sm:$0xff]   ;;  %v1136_v20 = vld [vmem:[#allocation6 + $0xe0] ss:$8 sps:$4 sm:$0xff]  }
  0x51   :  { %885 = vmatmul.mubr.msk.bf16.vlgmr.msra.gmra.mrb[0].mxu0 %vm110_vm0, %v73_v9  ;;  %946 = vmatprep.subr.bf16.mxu1 %v1128_v12  ;;  %v1137_v21 = vld [vmem:[#allocation6 + $0x60] ss:$8 sps:$4 sm:$0xff]   ;;  %v1138_v22 = vld [vmem:[#allocation6 + $0xf0] ss:$8 sps:$4 sm:$0xff]  }
  0x52   :  { %v1139_v23 = vld [vmem:[#allocation6 + $0x70] ss:$8 sps:$4 sm:$0xff]   ;;  %v1140_v24 = vld [vmem:[#allocation6 + $0x100] ss:$8 sps:$4 sm:$0xff]   ;;  %1025 = vmatprep.mubr.msk.bf16.mxu0 %vm1282_vm1, %v1281_v25 }
  0x53   :  { %1010 = vmatpush3.bf16.msra.mxu0 %v1140_v24  ;;  %v1141_v26 = vld [vmem:[#allocation6 + $0x110] ss:$8 sps:$4 sm:$0xff]   ;;  %v1142_v27 = vld [vmem:[#allocation6 + $0x120] ss:$8 sps:$4 sm:$0xff]  }
  0x54   :  { %947 = vmatpush3.bf16.msra.mxu1 %v1129_v13  ;;  %1011 = vmatprep.subr.bf16.mxu0 %v1281_v25  ;;  %v1143_v28 = vld [vmem:[#allocation6 + $0x130] ss:$8 sps:$4 sm:$0xff]   ;;  %v1144_v29 = vld [vmem:[#allocation6 + $0x140] ss:$8 sps:$4 sm:$0xff]  }
  0x55   :  { %948 = vmatprep.subr.bf16.mxu1 %v1130_v14  ;;  %v78_v33 = vld [vmem:[#allocation7] ss:$8 sm:$0x3]  ;;  %v1145_v49 = vld [vmem:[#allocation6 + $0x150] ss:$8 sps:$4 sm:$0xff]  }
  0x56   :  { %v83_v35 = vrot.slane %v78_v33, %v82_v32  ;;  %v87_v37 = vrot.slane %v78_v33, %v86_v34  ;;  %v1146_v50 = vld [vmem:[#allocation6 + $0x160] ss:$8 sps:$4 sm:$0xff]   ;;  %v1147_v51 = vld [vmem:[#allocation6 + $0x170] ss:$8 sps:$4 sm:$0xff]  }
  0x57   :  { %1012 = vmatpush3.bf16.msra.mxu0 %v1141_v26  ;;  %v1148_v52 = vld [vmem:[#allocation6 + $0x180] ss:$8 sps:$4 sm:$0xff]   ;;  %v1149_v53 = vld [vmem:[#allocation6 + $0x190] ss:$8 sps:$4 sm:$0xff]  }
  0x58   :  { %949 = vmatpush3.bf16.msra.mxu1 %v1131_v15  ;;  %1013 = vmatprep.subr.bf16.mxu0 %v1281_v25  ;;  %v1150_v54 = vld [vmem:[#allocation6 + $0x1a0] ss:$8 sps:$4 sm:$0xff]   ;;  %v1151_v55 = vld [vmem:[#allocation6 + $0x1b0] ss:$8 sps:$4 sm:$0xff]  }
  0x59   :  { %950 = vmatprep.subr.bf16.mxu1 %v1132_v16  ;;  %v1152_v56 = vld [vmem:[#allocation6 + $0x1c0] ss:$8 sps:$4 sm:$0xff]   ;;  %v1153_v57 = vld [vmem:[#allocation6 + $0x1d0] ss:$8 sps:$4 sm:$0xff]  }
  0x5a   :  { %v193_v62 = vld [vmem:[#allocation7 + $0x1] ss:$0 sm:$0xff]  ;;  %v1155_v7 = vld [vmem:[#allocation6 + $0x1f0] ss:$8 sps:$4 sm:$0xff]   ;;  %v349_v14 = vld [vmem:[#allocation7 + $0x2] ss:$0 sm:$0xff] }
  0x5b   :  { %1014 = vmatpush3.bf16.msra.mxu0 %v1142_v27  ;;  %v1154_v6 = vld [vmem:[#allocation6 + $0x1e0] ss:$8 sps:$4 sm:$0xff]   ;;  %v1157_v9 = vld [vmem:[#allocation6 + $0x210] ss:$8 sps:$4 sm:$0xff]  }
  0x5c   :  { %951 = vmatpush3.bf16.msra.mxu1 %v1133_v17  ;;  %1015 = vmatprep.subr.bf16.mxu0 %v1281_v25  ;;  %v1156_v8 = vld [vmem:[#allocation6 + $0x200] ss:$8 sps:$4 sm:$0xff]   ;;  %v1159_v11 = vld [vmem:[#allocation6 + $0x230] ss:$8 sps:$4 sm:$0xff]  }
  0x5d   :  { %952 = vmatprep.subr.bf16.mxu1 %v1134_v18  ;;  %v1158_v10 = vld [vmem:[#allocation6 + $0x220] ss:$8 sps:$4 sm:$0xff]   ;;  %v1161_v13 = vld [vmem:[#allocation6 + $0x250] ss:$8 sps:$4 sm:$0xff]  }
  0x5e   :  { %v1160_v12 = vld [vmem:[#allocation6 + $0x240] ss:$8 sps:$4 sm:$0xff]   ;;  %v1163_v24 = vld [vmem:[#allocation6 + $0x270] ss:$8 sps:$4 sm:$0xff]  }
  0x5f   :  { %1016 = vmatpush3.bf16.msra.mxu0 %v1143_v28  ;;  %v1164_v26 = vld [vmem:[#allocation6 + $0x280] ss:$8 sps:$4 sm:$0xff]   ;;  %v1165_v27 = vld [vmem:[#allocation6 + $0x290] ss:$8 sps:$4 sm:$0xff]  }
  0x60   :  { %953 = vmatpush3.bf16.msra.mxu1 %v1135_v19  ;;  %1017 = vmatprep.subr.bf16.mxu0 %v1281_v25  ;;  %v1166_v28 = vld [vmem:[#allocation6 + $0x2a0] ss:$8 sps:$4 sm:$0xff]   ;;  %v1169_v31 = vld [vmem:[#allocation6 + $0x2d0] ss:$8 sps:$4 sm:$0xff]  }
  0x61   :  { %954 = vmatprep.subr.bf16.mxu1 %v1136_v20  ;;  %v1168_v30 = vld [vmem:[#allocation6 + $0x2c0] ss:$8 sps:$4 sm:$0xff]  }
  0x62   :  { %v457_v32 = vld [vmem:[#allocation7 + $0x3] ss:$0 sm:$0xff] }
  0x63   :  { %1018 = vmatpush3.bf16.msra.mxu0 %v1144_v29  ;;  %v1167_v29 = vld [vmem:[#allocation6 + $0x2b0] ss:$8 sps:$4 sm:$0xff]  }
  0x64   :  { %955 = vmatpush3.bf16.msra.mxu1 %v1137_v21  ;;  %1019 = vmatprep.subr.bf16.mxu0 %v1281_v25 }
  0x65   :  { %956 = vmatprep.subr.bf16.mxu1 %v1138_v22 }
  0x67   :  { %1020 = vmatpush3.bf16.msra.mxu0 %v1145_v49  ;;  %v565_v49 = vld [vmem:[#allocation7 + $0x4] ss:$0 sm:$0xff] }
  0x68   :  { %957 = vmatpush3.bf16.msra.mxu1 %v1139_v23  ;;  %1021 = vmatprep.subr.bf16.mxu0 %v1281_v25  ;;  %v1162_v23 = vld [vmem:[#allocation6 + $0x260] ss:$8 sps:$4 sm:$0xff]  }
  0x69   :  { %1029 = vmatprep.subr.bf16.mxu1 %v1281_v25 }
  0x6b   :  { %1022 = vmatpush3.bf16.msra.mxu0 %v1146_v50 }
  0x6c   :  { %1023 = vmatprep.subr.bf16.mxu0 %v1281_v25 }
  0x6f   :  { %1024 = vmatpush3.bf16.msra.mxu0 %v1147_v51 }
  0x70   :  { %1049 = vmatprep.subr.bf16.mxu0 %v1281_v25 }
 0x124   :  { %v148_v36 = vpop.f32.mrb[0].mxu0 }
 0x125   :  { %v150_v38 = vpop.f32.mrb[1].mxu0  ;;  %v149_v40 = vadd.f32 %v148_v36, %v83_v35 }
 0x126   :  { %v152_v39 = vpop.f32.mrb[2].mxu0  ;;  %v151_v43 = vadd.f32 %v150_v38, %v87_v37 }
 0x127   :  { %v153_v41 = vadd.f32 %v152_v39, %v83_v35  ;;  %v154_v42 = vpop.f32.mrb[3].mxu0 }
 0x128   :  { %v155_v44 = vadd.f32 %v154_v42, %v87_v37  ;;  %v1171_v42 = vld [vmem:[#allocation6 + $0x2f0] ss:$8 sps:$4 sm:$0xff]  }
 0x129   :  { %v157_v45 = vpack.c.bf16 %v153_v41, %v149_v40  ;;  %v1170_v41 = vld [vmem:[#allocation6 + $0x2e0] ss:$8 sps:$4 sm:$0xff]  }
 0x12a   :  { %v158_v46 = vpack.c.bf16 %v155_v44, %v151_v43  ;;  %v1172_v43 = vld [vmem:[#allocation6 + $0x300] ss:$8 sps:$4 sm:$0xff]   ;;  %v1173_v44 = vld [vmem:[#allocation6 + $0x310] ss:$8 sps:$4 sm:$0xff]  }
 0x12b   :  { %v159_v48 = vmax.bf16 %v1280_v0, %v157_v45  ;;  %v1174_v45 = vld [vmem:[#allocation6 + $0x320] ss:$8 sps:$4 sm:$0xff]  }
 0x12c   :  { %v160_v47 = vmax.bf16 %v1280_v0, %v158_v46  ;;  %v1175_v46 = vld [vmem:[#allocation6 + $0x330] ss:$8 sps:$4 sm:$0xff]  }
 0x12e   :  { %322 = vmatprep.mubr.bf16.mxu1 %v160_v47  ;;  %v1176_v47 = vld [vmem:[#allocation6 + $0x340] ss:$8 sps:$4 sm:$0xff]  }
 0x12f   :  { %323 = vmatmul.mubr.bf16.vlgmr.msra.gmra.mrb[0].mxu1 %v159_v48  ;;  %v1177_v48 = vld [vmem:[#allocation6 + $0x350] ss:$8 sps:$4 sm:$0xff]  }
 0x130   :  { %1045 = vmatprep.mubr.msk.bf16.mxu1 %vm1282_vm1, %v1281_v25  ;;  %1030 = vmatpush3.bf16.msra.mxu1 %v1148_v52 }
 0x131   :  { %1031 = vmatprep.subr.bf16.mxu1 %v1281_v25 }
 0x134   :  { %1032 = vmatpush3.bf16.msra.mxu1 %v1149_v53 }
 0x135   :  { %1033 = vmatprep.subr.bf16.mxu1 %v1281_v25 }
 0x138   :  { %1034 = vmatpush3.bf16.msra.mxu1 %v1150_v54 }
 0x139   :  { %1035 = vmatprep.subr.bf16.mxu1 %v1281_v25 }
 0x13c   :  { %1036 = vmatpush3.bf16.msra.mxu1 %v1151_v55 }
 0x13d   :  { %1037 = vmatprep.subr.bf16.mxu1 %v1281_v25 }
 0x140   :  { %1038 = vmatpush3.bf16.msra.mxu1 %v1152_v56 }
 0x141   :  { %1039 = vmatprep.subr.bf16.mxu1 %v1281_v25 }
 0x144   :  { %1040 = vmatpush3.bf16.msra.mxu1 %v1153_v57 }
 0x145   :  { %1041 = vmatprep.subr.bf16.mxu1 %v1281_v25 }
 0x148   :  { %1042 = vmatpush3.bf16.msra.mxu1 %v1154_v6  ;;  %v781_v6 = vld [vmem:[#allocation7 + $0x6] ss:$0 sm:$0xff] }
 0x149   :  { %1043 = vmatprep.subr.bf16.mxu1 %v1281_v25 }
 0x14c   :  { %1044 = vmatpush3.bf16.msra.mxu1 %v1155_v7 }
 0x14d   :  { %1069 = vmatprep.subr.bf16.mxu1 %v1281_v25 }
 0x202   :  { %v958_v58 = vpop.f32.mrb[0].mxu1 }
 0x203   :  { %v959_v59 = vpop.f32.mrb[1].mxu1 }
 0x204   :  { %v960_v60 = vadd.f32 %v959_v59, %v958_v58  ;;  %v961_v61 = vpop.f32.mrb[2].mxu1  ;;  %v1178_v58 = vld [vmem:[#allocation6 + $0x360] ss:$8 sps:$4 sm:$0xff]   ;;  %v1179_v59 = vld [vmem:[#allocation6 + $0x370] ss:$8 sps:$4 sm:$0xff]  }
 0x205   :  { %v962_v63 = vpop.f32.mrb[3].mxu1 }
 0x206   :  { %v963_v1 = vadd.f32 %v962_v63, %v961_v61  ;;  %v325_v2 = vadd.f32 %v960_v60, %v193_v62  ;;  %v673_v60 = vld [vmem:[#allocation7 + $0x5] ss:$0 sm:$0xff] }
 0x208   :  { %v328_v3 = vadd.f32 %v963_v1, %v193_v62 }
 0x20a   :  { %v331_v4 = vpack.c.bf16 %v328_v3, %v325_v2 }
 0x20c   :  { %v332_v5 = vmax.bf16 %v1280_v0, %v331_v4 }
 0x20e   :  { %1026 = vmatmul.mubr.bf16.vlgmr.msra.gmra.mrb[4].mxu0 %v332_v5 }
 0x20f   :  { %1065 = vmatprep.mubr.msk.bf16.mxu0 %vm1282_vm1, %v1281_v25  ;;  %1050 = vmatpush3.bf16.msra.mxu0 %v1156_v8 }
 0x210   :  { %1051 = vmatprep.subr.bf16.mxu0 %v1281_v25 }
 0x213   :  { %1052 = vmatpush3.bf16.msra.mxu0 %v1157_v9 }
 0x214   :  { %1053 = vmatprep.subr.bf16.mxu0 %v1281_v25 }
 0x217   :  { %1054 = vmatpush3.bf16.msra.mxu0 %v1158_v10 }
 0x218   :  { %1055 = vmatprep.subr.bf16.mxu0 %v1281_v25 }
 0x21b   :  { %1056 = vmatpush3.bf16.msra.mxu0 %v1159_v11 }
 0x21c   :  { %1057 = vmatprep.subr.bf16.mxu0 %v1281_v25 }
 0x21f   :  { %1058 = vmatpush3.bf16.msra.mxu0 %v1160_v12 }
 0x220   :  { %1059 = vmatprep.subr.bf16.mxu0 %v1281_v25 }
 0x223   :  { %1060 = vmatpush3.bf16.msra.mxu0 %v1161_v13 }
 0x224   :  { %1061 = vmatprep.subr.bf16.mxu0 %v1281_v25 }
 0x227   :  { %1062 = vmatpush3.bf16.msra.mxu0 %v1162_v23 }
 0x228   :  { %1063 = vmatprep.subr.bf16.mxu0 %v1281_v25 }
 0x22b   :  { %1064 = vmatpush3.bf16.msra.mxu0 %v1163_v24 }
 0x22c   :  { %1089 = vmatprep.subr.bf16.mxu0 %v1281_v25 }
 0x2e1   :  { %v432_v15 = vpop.f32.mrb[4].mxu0 }
 0x2e2   :  { %v1027_v16 = vpop.f32.mrb[5].mxu0  ;;  %v433_v18 = vadd.f32 %v432_v15, %v349_v14 }
 0x2e3   :  { %v435_v17 = vpop.f32.mrb[6].mxu0 }
 0x2e4   :  { %v436_v19 = vadd.f32 %v435_v17, %v349_v14  ;;  %v1028_v20 = vpop.f32.mrb[7].mxu0 }
 0x2e6   :  { %v439_v21 = vpack.c.bf16 %v436_v19, %v433_v18 }
 0x2e8   :  { %v440_v22 = vmax.bf16 %v1280_v0, %v439_v21 }
 0x2ea   :  { %1046 = vmatmul.mubr.bf16.vlgmr.msra.gmra.mrb[4].mxu1 %v440_v22 }
 0x2eb   :  { %1085 = vmatprep.mubr.msk.bf16.mxu1 %vm1282_vm1, %v1281_v25  ;;  %1070 = vmatpush3.bf16.msra.mxu1 %v1164_v26 }
 0x2ec   :  { %1071 = vmatprep.subr.bf16.mxu1 %v1281_v25 }
 0x2ef   :  { %1072 = vmatpush3.bf16.msra.mxu1 %v1165_v27 }
 0x2f0   :  { %1073 = vmatprep.subr.bf16.mxu1 %v1281_v25 }
 0x2f3   :  { %1074 = vmatpush3.bf16.msra.mxu1 %v1166_v28 }
 0x2f4   :  { %1075 = vmatprep.subr.bf16.mxu1 %v1281_v25 }
 0x2f7   :  { %1076 = vmatpush3.bf16.msra.mxu1 %v1167_v29 }
 0x2f8   :  { %1077 = vmatprep.subr.bf16.mxu1 %v1281_v25 }
 0x2fb   :  { %1078 = vmatpush3.bf16.msra.mxu1 %v1168_v30 }
 0x2fc   :  { %1079 = vmatprep.subr.bf16.mxu1 %v1281_v25 }
 0x2ff   :  { %1080 = vmatpush3.bf16.msra.mxu1 %v1169_v31 }
 0x300   :  { %1081 = vmatprep.subr.bf16.mxu1 %v1281_v25 }
 0x303   :  { %1082 = vmatpush3.bf16.msra.mxu1 %v1170_v41 }
 0x304   :  { %1083 = vmatprep.subr.bf16.mxu1 %v1281_v25 }
 0x307   :  { %1084 = vmatpush3.bf16.msra.mxu1 %v1171_v42 }
 0x3bd   :  { %v540_v33 = vpop.f32.mrb[4].mxu1 }
 0x3be   :  { %v1047_v34 = vpop.f32.mrb[5].mxu1  ;;  %v541_v36 = vadd.f32 %v540_v33, %v457_v32 }
 0x3bf   :  { %v543_v35 = vpop.f32.mrb[6].mxu1 }
 0x3c0   :  { %v544_v37 = vadd.f32 %v543_v35, %v457_v32  ;;  %v1048_v38 = vpop.f32.mrb[7].mxu1 }
 0x3c2   :  { %v547_v39 = vpack.c.bf16 %v544_v37, %v541_v36 }
 0x3c4   :  { %v548_v40 = vmax.bf16 %v1280_v0, %v547_v39 }
 0x3c6   :  { %1066 = vmatmul.mubr.bf16.vlgmr.msra.gmra.mrb[8].mxu0 %v548_v40 }
 0x3c7   :  { %1105 = vmatprep.mubr.msk.bf16.mxu0 %vm1282_vm1, %v1281_v25  ;;  %1090 = vmatpush3.bf16.msra.mxu0 %v1172_v43 }
 0x3c8   :  { %1091 = vmatprep.subr.bf16.mxu0 %v1281_v25 }
 0x3cb   :  { %1092 = vmatpush3.bf16.msra.mxu0 %v1173_v44 }
 0x3cc   :  { %1093 = vmatprep.subr.bf16.mxu0 %v1281_v25 }
 0x3cf   :  { %1094 = vmatpush3.bf16.msra.mxu0 %v1174_v45 }
 0x3d0   :  { %1095 = vmatprep.subr.bf16.mxu0 %v1281_v25 }
 0x3d3   :  { %1096 = vmatpush3.bf16.msra.mxu0 %v1175_v46 }
 0x3d4   :  { %1097 = vmatprep.subr.bf16.mxu0 %v1281_v25 }
 0x3d7   :  { %1098 = vmatpush3.bf16.msra.mxu0 %v1176_v47 }
 0x3d8   :  { %1099 = vmatprep.subr.bf16.mxu0 %v1281_v25 }
 0x3db   :  { %1100 = vmatpush3.bf16.msra.mxu0 %v1177_v48 }
 0x3dc   :  { %1101 = vmatprep.subr.bf16.mxu0 %v1281_v25 }
 0x3df   :  { %1102 = vmatpush3.bf16.msra.mxu0 %v1178_v58 }
 0x3e0   :  { %1103 = vmatprep.subr.bf16.mxu0 %v1281_v25 }
 0x3e3   :  { %1104 = vmatpush3.bf16.msra.mxu0 %v1179_v59 }
 0x499   :  { %v648_v50 = vpop.f32.mrb[8].mxu0 }
 0x49a   :  { %v1067_v51 = vpop.f32.mrb[9].mxu0  ;;  %v649_v53 = vadd.f32 %v648_v50, %v565_v49 }
 0x49b   :  { %v651_v52 = vpop.f32.mrb[10].mxu0 }
 0x49c   :  { %v652_v54 = vadd.f32 %v651_v52, %v565_v49  ;;  %v1068_v55 = vpop.f32.mrb[11].mxu0 }
 0x49e   :  { %v655_v56 = vpack.c.bf16 %v652_v54, %v649_v53 }
 0x4a0   :  { %v656_v57 = vmax.bf16 %v1280_v0, %v655_v56 }
 0x4a2   :  { %1086 = vmatmul.mubr.bf16.vlgmr.msra.gmra.mrb[8].mxu1 %v656_v57 }
 0x575   :  { %v756_v61 = vpop.f32.mrb[8].mxu1 }
 0x576   :  { %v1087_v62 = vpop.f32.mrb[9].mxu1  ;;  %v757_v1 = vadd.f32 %v756_v61, %v673_v60 }
 0x577   :  { %v759_v63 = vpop.f32.mrb[10].mxu1 }
 0x578   :  { %v760_v2 = vadd.f32 %v759_v63, %v673_v60  ;;  %v1088_v3 = vpop.f32.mrb[11].mxu1 }
 0x57a   :  { %v763_v4 = vpack.c.bf16 %v760_v2, %v757_v1 }
 0x57c   :  { %v764_v5 = vmax.bf16 %v1280_v0, %v763_v4 }
 0x57e   :  { %1106 = vmatmul.mubr.bf16.vlgmr.msra.gmra.mrb[12].mxu0 %v764_v5 }
 0x651   :  { %v864_v7 = vpop.f32.mrb[12].mxu0 }
 0x652   :  { %v865_v8 = vadd.f32 %v864_v7, %v781_v6  ;;  %v1107_v9 = vpop.f32.mrb[13].mxu0 }
 0x653   :  { %v867_v10 = vpop.f32.mrb[14].mxu0 }
 0x654   :  { %872 = vst.msk [vmem:[%s1440_s4] sm:$0xff] %vm871_vm2, %v865_v8  ;;  %v868_v25 = vadd.f32 %v867_v10, %v781_v6  ;;  %v1108_v11 = vpop.f32.mrb[15].mxu0 }
 0x656   :  { %873 = vst.msk [vmem:[%s1440_s4 + $0x8] sm:$0xff] %vm871_vm2, %v868_v25 }
 0x657   :  { %878 = vsyncpa [#allocation3], 1 }
 0x658   :  { %879 = vsyncpa [#allocation5], 1 }
 0x659   :  { %880 = vsyncpa [#allocation8], 1 }

</bundles_post_ra>
